<compile_context>
chip_gen: v7x
topology: tpu7x:2x2x1
jax: 0.10.0
libtpu: 0.0.40
codegen_flags: <defaults>
</compile_context>

<pallas_src>
import functools

import jax
import jax.numpy as jnp
from jax.experimental import pallas as pl
from jax.experimental.pallas import tpu as pltpu

k_RELIAB_THRD = 0.7
k_REPEAT_THRD = 0.7


def _round_up(x, m):
    return ((x + m - 1) // m) * m


def _nms_mask_kernel(rep_ref, top_ref, bot_ref, rel_ref, out_ref, *,
                     tile_h, w_pad, H, W, rel_thr, rep_thr):
    """One row-tile of the 3x3-maxpool NMS mask.

    rep_ref : [tile_h, w_pad] repeatability rows of this tile (edges partial)
    top_ref : [8, w_pad]      8 rows ending just above the tile (halo = last)
    bot_ref : [8, w_pad]      8 rows starting just below the tile (halo = 1st)
    rel_ref : [tile_h, w_pad] reliability rows of this tile
    out_ref : [tile_h, w_pad] int8 mask block (OOB rows/cols dropped on store)
    """
    dtype = rep_ref.dtype
    neg = jnp.asarray(-jnp.inf, dtype=dtype)
    i = pl.program_id(0)
    n = pl.num_programs(0)

    def hmax3(v):
        # Horizontal 3-tap max.  Column 0's left neighbour and column W-1's
        # right neighbour are the MaxPool2d(3,1,1) -inf border; this also
        # keeps garbage from the partial-block lanes (>= W) out of column W-1.
        lane = jax.lax.broadcasted_iota(jnp.int32, v.shape, 1)
        left = jnp.where(lane == 0, neg, pltpu.roll(v, shift=1, axis=1))
        right = jnp.where(lane >= W - 1, neg,
                          pltpu.roll(v, shift=w_pad - 1, axis=1))
        return jnp.maximum(v, jnp.maximum(left, right))

    x = rep_ref[...]
    row = jax.lax.broadcasted_iota(jnp.int32, x.shape, 0)
    # Rows past the image end (last, partial tile) are undefined -> force -inf
    # so they never win a vertical max and never pass the rep threshold.
    x = jnp.where(row < (H - i * tile_h), x, neg)

    rmax = hmax3(x)                                   # [tile_h, w_pad]

    # Halo rows: override with -inf on the first/last tile (image border).
    t_src = jnp.where(i == 0, neg, top_ref[7:8, :])   # row above the tile
    b_src = jnp.where(i == n - 1, neg, bot_ref[0:1, :])  # row below the tile
    t_rmax = hmax3(t_src)                             # [1, w_pad]
    b_rmax = hmax3(b_src)                             # [1, w_pad]

    # Vertical 3-tap max; boundary rows take their neighbour from the halos.
    up = jnp.where(row == 0, t_rmax, pltpu.roll(rmax, shift=1, axis=0))
    down = jnp.where(row == tile_h - 1, b_rmax,
                     pltpu.roll(rmax, shift=tile_h - 1, axis=0))
    cmax = jnp.maximum(rmax, jnp.maximum(up, down))   # 3x3 max (incl. centre)

    maxima = (x == cmax) & (x >= rep_thr) & (rel_ref[...] >= rel_thr)
    out_ref[...] = maxima.astype(jnp.int8)


def nms_mask(reliability, repeatability, rel_thr=k_RELIAB_THRD,
             rep_thr=k_REPEAT_THRD, tile_h=512):
    """reliability, repeatability: [1, 1, H, W]. Returns [H, W] int8 mask."""
    assert reliability.shape == repeatability.shape
    assert reliability.shape[0] == 1 and reliability.shape[1] == 1
    H, W = int(reliability.shape[2]), int(reliability.shape[3])

    rep2d = repeatability[0, 0]
    rel2d = reliability[0, 0]
    # Keep bf16/f32 end-to-end (no copy); anything exotic falls back to f32.
    if rep2d.dtype not in (jnp.float32, jnp.bfloat16):
        rep2d = rep2d.astype(jnp.float32)
    if rel2d.dtype != rep2d.dtype:
        rel2d = rel2d.astype(rep2d.dtype)

    # Lane-dense in-kernel width; edge columns >= W are partial-block padding.
    w_pad = _round_up(W, 128)

    # Row-tile height: multiple of 32 (int8 out tiling), >= 2 tiles when the
    # image allows it (keeps both v7x TensorCores busy on the parallel axis),
    # capped so the double-buffered footprint stays under the scoped VMEM.
    in_bytes = jnp.dtype(rep2d.dtype).itemsize
    tile_h = _round_up(max(int(tile_h), 32), 32)
    tile_h = min(tile_h, max(32, _round_up(pl.cdiv(H, 2), 32)))
    per_row_bytes = w_pad * (2 * in_bytes + 1)        # rep + rel + int8 out
    vmem_budget = 24 * 1024 * 1024                    # headroom under 32 MiB
    tile_h = min(tile_h, max(32, (vmem_budget // (2 * per_row_bytes)) // 32 * 32))

    num_tiles = pl.cdiv(H, tile_h)
    r8 = tile_h // 8                                  # tile height in 8-row blocks
    n_row_blocks = pl.cdiv(H, 8)                      # 8-row blocks in the image

    kernel = functools.partial(_nms_mask_kernel, tile_h=tile_h, w_pad=w_pad,
                               H=H, W=W,
                               rel_thr=float(rel_thr), rep_thr=float(rep_thr))

    mask = pl.pallas_call(
        kernel,
        out_shape=jax.ShapeDtypeStruct((H, W), jnp.int8),
        grid=(num_tiles,),
        in_specs=[
            # main tile: image rows [i*tile_h, (i+1)*tile_h)  (last one partial)
            pl.BlockSpec((tile_h, w_pad), lambda i: (i, 0)),
            # 8 rows ending just above the tile (clamped to 0 for the 1st tile;
            # the kernel overrides that tile's halo with -inf).
            pl.BlockSpec((8, w_pad),
                         lambda i: (jnp.maximum(i * r8 - 1, 0), 0)),
            # 8 rows starting just below the tile (clamped for the last tile;
            # overridden with -inf in-kernel).
            pl.BlockSpec((8, w_pad),
                         lambda i: (jnp.minimum((i + 1) * r8,
                                                n_row_blocks - 1), 0)),
            pl.BlockSpec((tile_h, w_pad), lambda i: (i, 0)),
        ],
        out_specs=pl.BlockSpec((tile_h, w_pad), lambda i: (i, 0)),
        compiler_params=pltpu.CompilerParams(
            dimension_semantics=("parallel",),
            vmem_limit_bytes=32 * 1024 * 1024),
    )(rep2d, rep2d, rep2d, rel2d)

    return mask                                       # exactly (H, W), no slice


def non_max_suppression(reliability_list, repeatability_list,
                        rel_thr=k_RELIAB_THRD, rep_thr=k_REPEAT_THRD,
                        max_keypoints=None):
    """Mirrors NonMaxSuppression.forward: lists of length 1, (2, N) coords.

    If max_keypoints is given, a sized (jittable, on-device) nonzero is used
    with fill_value=-1 for unused slots; otherwise the exact dynamic-shape
    result is returned (forces a host sync, matching torch semantics).
    """
    assert len(reliability_list) == len(repeatability_list) == 1
    reliability, repeatability = reliability_list[0], repeatability_list[0]
    mask = nms_mask(reliability, repeatability, rel_thr, rep_thr)
    # torch: maxima.nonzero().t()[2:4] on a [1,1,H,W] bool -> rows (y, x).
    if max_keypoints is not None:
        ys, xs = jnp.nonzero(mask, size=max_keypoints, fill_value=-1)
    else:
        # TODO(synk): dynamic-shape nonzero has no on-device equivalent; pass
        # max_keypoints to keep the whole path jittable and avoid host sync.
        ys, xs = jnp.nonzero(mask)
    return jnp.stack([ys, xs], axis=0)


def _reference_mask(reliability, repeatability, rel_thr, rep_thr):
    rep2d = repeatability[0, 0]
    rel2d = reliability[0, 0]
    H, W = rep2d.shape
    pad = jnp.pad(rep2d, ((1, 1), (1, 1)), constant_values=-jnp.inf)
    m = pad[0:H, 0:W]
    for dy in range(3):
        for dx in range(3):
            m = jnp.maximum(m, pad[dy:dy + H, dx:dx + W])
    return (rep2d == m) & (rep2d >= rep_thr) & (rel2d >= rel_thr)


if __name__ == "__main__":
    key = jax.random.PRNGKey(0)

    # case 1: small non-aligned map, single partial tile (lane + row masking)
    # case 2: multi-tile f32 map with a tiny tile and a partial last tile
    #         (exercises halos, clamped index_maps, last-tile row masking)
    # case 3: bf16 map with W an exact multiple of 128 (lane-edge guard path)
    cases = [
        (20, 100, None, jnp.float32),
        (80, 200, 32, jnp.float32),
        (64, 256, None, jnp.bfloat16),
    ]
    for (H, W, th, dt) in cases:
        k1, k2 = jax.random.split(jax.random.fold_in(key, H * 1000 + W))
        reliability = jax.random.uniform(k1, (1, 1, H, W)).astype(dt)
        repeatability = jax.random.uniform(k2, (1, 1, H, W)).astype(dt)

        kwargs = {} if th is None else {"tile_h": th}
        got = nms_mask(reliability, repeatability, **kwargs).astype(bool)
        ref = _reference_mask(reliability, repeatability,
                              k_RELIAB_THRD, k_REPEAT_THRD)
        got = jax.block_until_ready(got)
        ref = jax.block_until_ready(ref)
        assert got.shape == ref.shape == (H, W)
        assert bool(jnp.array_equal(got, ref)), (H, W, th, str(dt))

    coords = non_max_suppression([reliability], [repeatability])
    coords = jax.block_until_ready(coords)
    assert coords.shape[0] == 2

    coords_sized = non_max_suppression([reliability], [repeatability],
                                       max_keypoints=512)
    coords_sized = jax.block_until_ready(coords_sized)
    assert coords_sized.shape == (2, 512)

    print("KERNEL_OK")
</pallas_src>

<mosaic_0001>
module attributes {stable_mosaic.version = 11 : i64} {
  func.func @_nms_mask_kernel(%arg0: i32, %arg1: memref<32x128xf32, #tpu.memory_space<vmem>>, %arg2: memref<8x128xf32, #tpu.memory_space<vmem>>, %arg3: memref<8x128xf32, #tpu.memory_space<vmem>>, %arg4: memref<32x128xf32, #tpu.memory_space<vmem>>, %arg5: memref<32x128xi8, #tpu.memory_space<vmem>>) attributes {dimension_semantics = [#tpu.dimension_semantics<parallel>], iteration_bounds = array<i64: 1>, scalar_prefetch = 0 : i64, scratch_operands = 0 : i64, tpu.core_type = #tpu.core_type<tc>, window_params = [{transform_indices = @transform_0, window_bounds = array<i64: 32, 128>}, {transform_indices = @transform_1, window_bounds = array<i64: 8, 128>}, {transform_indices = @transform_2, window_bounds = array<i64: 8, 128>}, {transform_indices = @transform_3, window_bounds = array<i64: 32, 128>}, {transform_indices = @transform_4, window_bounds = array<i64: 32, 128>}]} {
    %c0 = arith.constant 0 : index
    %c0_0 = arith.constant 0 : index
    %0 = vector.load %arg1[%c0, %c0_0] : memref<32x128xf32, #tpu.memory_space<vmem>>, vector<32x128xf32>
    %1 = tpu.iota {dimensions = array<i32: 0>} : vector<32x128xi32>
    %c32_i32 = arith.constant 32 : i32
    %2 = arith.muli %arg0, %c32_i32 : i32
    %c20_i32 = arith.constant 20 : i32
    %3 = arith.subi %c20_i32, %2 : i32
    %4 = vector.broadcast %3 : i32 to vector<32x128xi32>
    %5 = arith.cmpi slt, %1, %4 : vector<32x128xi32>
    %cst = arith.constant 0xFF800000 : f32
    %6 = vector.broadcast %cst : f32 to vector<32x128xf32>
    %7 = arith.select %5, %0, %6 : vector<32x128xi1>, vector<32x128xf32>
    %8 = tpu.iota {dimensions = array<i32: 1>} : vector<32x128xi32>
    %c0_i32 = arith.constant 0 : i32
    %9 = vector.broadcast %c0_i32 : i32 to vector<32x128xi32>
    %10 = arith.cmpi eq, %8, %9 : vector<32x128xi32>
    %c1_i32 = arith.constant 1 : i32
    %11 = tpu.dynamic_rotate %7 by %c1_i32 dim 1 : vector<32x128xf32>, i32 -> vector<32x128xf32>
    %cst_1 = arith.constant 0xFF800000 : f32
    %12 = vector.broadcast %cst_1 : f32 to vector<32x128xf32>
    %13 = arith.select %10, %12, %11 : vector<32x128xi1>, vector<32x128xf32>
    %c99_i32 = arith.constant 99 : i32
    %14 = vector.broadcast %c99_i32 : i32 to vector<32x128xi32>
    %15 = arith.cmpi sge, %8, %14 : vector<32x128xi32>
    %c127_i32 = arith.constant 127 : i32
    %16 = tpu.dynamic_rotate %7 by %c127_i32 dim 1 : vector<32x128xf32>, i32 -> vector<32x128xf32>
    %cst_2 = arith.constant 0xFF800000 : f32
    %17 = vector.broadcast %cst_2 : f32 to vector<32x128xf32>
    %18 = arith.select %15, %17, %16 : vector<32x128xi1>, vector<32x128xf32>
    %19 = arith.maximumf %13, %18 : vector<32x128xf32>
    %20 = arith.maximumf %7, %19 : vector<32x128xf32>
    %c0_i32_3 = arith.constant 0 : i32
    %21 = arith.cmpi eq, %arg0, %c0_i32_3 : i32
    %c7 = arith.constant 7 : index
    %c0_4 = arith.constant 0 : index
    %22 = vector.load %arg2[%c7, %c0_4] : memref<8x128xf32, #tpu.memory_space<vmem>>, vector<1x128xf32>
    %cst_5 = arith.constant 0xFF800000 : f32
    %23 = vector.broadcast %cst_5 : f32 to vector<1x128xf32>
    %24 = arith.select %21, %23, %22 : vector<1x128xf32>
    %c0_i32_6 = arith.constant 0 : i32
    %25 = arith.cmpi eq, %arg0, %c0_i32_6 : i32
    %c0_7 = arith.constant 0 : index
    %c0_8 = arith.constant 0 : index
    %26 = vector.load %arg3[%c0_7, %c0_8] : memref<8x128xf32, #tpu.memory_space<vmem>>, vector<1x128xf32>
    %cst_9 = arith.constant 0xFF800000 : f32
    %27 = vector.broadcast %cst_9 : f32 to vector<1x128xf32>
    %28 = arith.select %25, %27, %26 : vector<1x128xf32>
    %29 = tpu.iota {dimensions = array<i32: 1>} : vector<1x128xi32>
    %c0_i32_10 = arith.constant 0 : i32
    %30 = vector.broadcast %c0_i32_10 : i32 to vector<1x128xi32>
    %31 = arith.cmpi eq, %29, %30 : vector<1x128xi32>
    %c1_i32_11 = arith.constant 1 : i32
    %32 = tpu.dynamic_rotate %24 by %c1_i32_11 dim 1 : vector<1x128xf32>, i32 -> vector<1x128xf32>
    %cst_12 = arith.constant 0xFF800000 : f32
    %33 = vector.broadcast %cst_12 : f32 to vector<1x128xf32>
    %34 = arith.select %31, %33, %32 : vector<1x128xi1>, vector<1x128xf32>
    %c99_i32_13 = arith.constant 99 : i32
    %35 = vector.broadcast %c99_i32_13 : i32 to vector<1x128xi32>
    %36 = arith.cmpi sge, %29, %35 : vector<1x128xi32>
    %c127_i32_14 = arith.constant 127 : i32
    %37 = tpu.dynamic_rotate %24 by %c127_i32_14 dim 1 : vector<1x128xf32>, i32 -> vector<1x128xf32>
    %cst_15 = arith.constant 0xFF800000 : f32
    %38 = vector.broadcast %cst_15 : f32 to vector<1x128xf32>
    %39 = arith.select %36, %38, %37 : vector<1x128xi1>, vector<1x128xf32>
    %40 = arith.maximumf %34, %39 : vector<1x128xf32>
    %41 = arith.maximumf %24, %40 : vector<1x128xf32>
    %42 = tpu.iota {dimensions = array<i32: 1>} : vector<1x128xi32>
    %c0_i32_16 = arith.constant 0 : i32
    %43 = vector.broadcast %c0_i32_16 : i32 to vector<1x128xi32>
    %44 = arith.cmpi eq, %42, %43 : vector<1x128xi32>
    %c1_i32_17 = arith.constant 1 : i32
    %45 = tpu.dynamic_rotate %28 by %c1_i32_17 dim 1 : vector<1x128xf32>, i32 -> vector<1x128xf32>
    %cst_18 = arith.constant 0xFF800000 : f32
    %46 = vector.broadcast %cst_18 : f32 to vector<1x128xf32>
    %47 = arith.select %44, %46, %45 : vector<1x128xi1>, vector<1x128xf32>
    %c99_i32_19 = arith.constant 99 : i32
    %48 = vector.broadcast %c99_i32_19 : i32 to vector<1x128xi32>
    %49 = arith.cmpi sge, %42, %48 : vector<1x128xi32>
    %c127_i32_20 = arith.constant 127 : i32
    %50 = tpu.dynamic_rotate %28 by %c127_i32_20 dim 1 : vector<1x128xf32>, i32 -> vector<1x128xf32>
    %cst_21 = arith.constant 0xFF800000 : f32
    %51 = vector.broadcast %cst_21 : f32 to vector<1x128xf32>
    %52 = arith.select %49, %51, %50 : vector<1x128xi1>, vector<1x128xf32>
    %53 = arith.maximumf %47, %52 : vector<1x128xf32>
    %54 = arith.maximumf %28, %53 : vector<1x128xf32>
    %c0_i32_22 = arith.constant 0 : i32
    %55 = vector.broadcast %c0_i32_22 : i32 to vector<32x128xi32>
    %56 = arith.cmpi eq, %1, %55 : vector<32x128xi32>
    %c1_i32_23 = arith.constant 1 : i32
    %57 = tpu.dynamic_rotate %20 by %c1_i32_23 dim 0 : vector<32x128xf32>, i32 -> vector<32x128xf32>
    %58 = vector.shape_cast %41 : vector<1x128xf32> to vector<1x128xf32>
    %59 = vector.broadcast %58 : vector<1x128xf32> to vector<32x128xf32>
    %60 = arith.select %56, %59, %57 : vector<32x128xi1>, vector<32x128xf32>
    %c31_i32 = arith.constant 31 : i32
    %61 = vector.broadcast %c31_i32 : i32 to vector<32x128xi32>
    %62 = arith.cmpi eq, %1, %61 : vector<32x128xi32>
    %c31_i32_24 = arith.constant 31 : i32
    %63 = tpu.dynamic_rotate %20 by %c31_i32_24 dim 0 : vector<32x128xf32>, i32 -> vector<32x128xf32>
    %64 = vector.shape_cast %54 : vector<1x128xf32> to vector<1x128xf32>
    %65 = vector.broadcast %64 : vector<1x128xf32> to vector<32x128xf32>
    %66 = arith.select %62, %65, %63 : vector<32x128xi1>, vector<32x128xf32>
    %67 = arith.maximumf %60, %66 : vector<32x128xf32>
    %68 = arith.maximumf %20, %67 : vector<32x128xf32>
    %69 = arith.cmpf oeq, %7, %68 : vector<32x128xf32>
    %cst_25 = arith.constant 0.699999988 : f32
    %70 = vector.broadcast %cst_25 : f32 to vector<32x128xf32>
    %71 = arith.cmpf oge, %7, %70 : vector<32x128xf32>
    %72 = arith.andi %69, %71 : vector<32x128xi1>
    %c0_26 = arith.constant 0 : index
    %c0_27 = arith.constant 0 : index
    %73 = vector.load %arg4[%c0_26, %c0_27] : memref<32x128xf32, #tpu.memory_space<vmem>>, vector<32x128xf32>
    %cst_28 = arith.constant 0.699999988 : f32
    %74 = vector.broadcast %cst_28 : f32 to vector<32x128xf32>
    %75 = arith.cmpf oge, %73, %74 : vector<32x128xf32>
    %76 = arith.andi %72, %75 : vector<32x128xi1>
    %77 = arith.extui %76 : vector<32x128xi1> to vector<32x128xi8>
    %c0_29 = arith.constant 0 : index
    %c0_30 = arith.constant 0 : index
    %78 = vector.load %arg5[%c0_29, %c0_30] : memref<32x128xi8, #tpu.memory_space<vmem>>, vector<32x128xi8>
    tpu.vector_store %arg5[%c0_29, %c0_30], %77 {strides = array<i32>} : memref<32x128xi8, #tpu.memory_space<vmem>>, vector<32x128xi8>,
    return
  }
  func.func @transform_0(%arg0: i32) -> (i32, i32) {
    %c0_i32 = arith.constant 0 : i32
    %c0_i32_0 = arith.constant 0 : i32
    return %arg0, %c0_i32 : i32, i32
  }
  func.func @transform_1(%arg0: i32) -> (i32, i32) {
    %c4_i32 = arith.constant 4 : i32
    %0 = arith.muli %arg0, %c4_i32 : i32
    %c1_i32 = arith.constant 1 : i32
    %1 = arith.subi %0, %c1_i32 : i32
    %c0_i32 = arith.constant 0 : i32
    %2 = arith.maxsi %1, %c0_i32 : i32
    %c0_i32_0 = arith.constant 0 : i32
    %c0_i32_1 = arith.constant 0 : i32
    return %2, %c0_i32_0 : i32, i32
  }
  func.func @transform_2(%arg0: i32) -> (i32, i32) {
    %c1_i32 = arith.constant 1 : i32
    %0 = arith.addi %arg0, %c1_i32 : i32
    %c4_i32 = arith.constant 4 : i32
    %1 = arith.muli %0, %c4_i32 : i32
    %c2_i32 = arith.constant 2 : i32
    %2 = arith.minsi %1, %c2_i32 : i32
    %c0_i32 = arith.constant 0 : i32
    %c0_i32_0 = arith.constant 0 : i32
    return %2, %c0_i32 : i32, i32
  }
  func.func @transform_3(%arg0: i32) -> (i32, i32) {
    %c0_i32 = arith.constant 0 : i32
    %c0_i32_0 = arith.constant 0 : i32
    return %arg0, %c0_i32 : i32, i32
  }
  func.func @transform_4(%arg0: i32) -> (i32, i32) {
    %c0_i32 = arith.constant 0 : i32
    %c0_i32_0 = arith.constant 0 : i32
    return %arg0, %c0_i32 : i32, i32
  }
}

</mosaic_0001>

<bundles_post_ra>
// kernel: tpu_custom_call.1
= control target key start
LH: loop header
LB: loop body
LE: loop exit
PB: predicated region body
PF: predicated region fallthrough
CT: control target
= control target key end

     0   :  { %9 = vsyncpa [#allocation3], 0  ;;  %s597_s0 = inlined_call_operand.hbm [shape: f32[20,100], index: 0, kind: input, shape index: {}]   ;;  %s598_s1 = inlined_call_operand.hbm [shape: f32[20,100], index: 1, kind: input, shape index: {}]   ;;  %s599_s2 = inlined_call_operand.hbm [shape: f32[20,100], index: 2, kind: input, shape index: {}]   ;;  %s600_s3 = inlined_call_operand.hbm [shape: f32[20,100], index: 3, kind: input, shape index: {}]   ;;  %s601_s4 = inlined_call_operand.hbm [shape: s8[20,100], index: 4, kind: output, shape index: {}]  }
   0x1   :  { %10 = vsyncpa [#allocation6], 0 }
   0x2   :  { %11 = vsyncpa [#allocation9], 0 }
   0x3   :  { %12 = vsyncpa [#allocation4], 0 }
   0x4   :  { %17 = vsyncadd [#allocation3], 128  ;;  %s434_s15 = smov [#allocation5]   ;;  %s435_s17 = smov [#allocation2]  }
   0x5   :  { %s37_s16 = sshll.u32 %s434_s15, 4  ;;  %s18_s18 = sshll.u32 %s435_s17, 4  ;;  %s38_s16 = int_to_ptr.vmem [resolvable:$true] %s37_s16  ;;  %s473_s18 = int_to_ptr.vmem [resolvable:$true] %s18_s18 }
   0x6   :  { %s313_s21 = scalar_lea.hbm %s598_s1, 128  ;;  %s315_s26 = scalar_lea.hbm %s598_s1, 384 }
   0x7   :  { %p314_p0 = scmp.ne.s32.totalorder %s598_s1, %s313_s21  ;;  %p316_p1 = scmp.lt.u32.totalorder %s315_s26, %s313_s21 }
   0x8   :  { %p317_p2 = scmp.lt.u32.totalorder %s313_s21, %s598_s1 }
   0xa   :  { %p318_p3 = por %p317_p2, %p316_p1 }
   0xc   :  { %p319_p4 = pnand %p318_p3, %p314_p0 }
   0xe   :  { %322 = shalt.err (!%p319_p4)
}
   0xf   :  { %s323_s29 = scalar_lea.vmem %s38_s16, 128  ;;  %p328_p6 = scmp.lt.s32.totalorder %s38_s16, %s38_s16 }
  0x10   :  { %p324_p5 = scmp.ne.s32.totalorder %s38_s16, %s323_s29  ;;  %p329_p7 = scmp.lt.s32.totalorder %s323_s29, %s323_s29 }
  0x12   :  { %p330_p8 = por %p329_p7, %p328_p6 }
  0x14   :  { %p331_p9 = pnand %p330_p8, %p324_p5 }
  0x16   :  { %334 = shalt.err (!%p331_p9)
}
  0x17   :  { %40 = dma.hbm_to_vmem [thread:$0]  %s598_s1, 128, %s38_s16, [#allocation6]  }
  0x18   :  { %s335_s8 = scalar_lea.hbm %s597_s0, 384 }
  0x19   :  { %p336_p10 = scmp.ne.s32.totalorder %s597_s0, %s335_s8  ;;  %p339_p11 = scmp.lt.u32.totalorder %s335_s8, %s597_s0 }
  0x1b   :  { %p341_p12 = pnand %p339_p11, %p336_p10 }
  0x1d   :  { %344 = shalt.err (!%p341_p12)
}
  0x1e   :  { %s345_s13 = scalar_lea.vmem %s473_s18, 384  ;;  %s349_s1 = scalar_lea.vmem %s473_s18, 512 }
  0x1f   :  { %p346_p13 = scmp.ne.s32.totalorder %s473_s18, %s345_s13  ;;  %p350_p0 = scmp.lt.s32.totalorder %s473_s18, %s473_s18 }
  0x20   :  { %p351_p1 = scmp.lt.s32.totalorder %s349_s1, %s345_s13 }
  0x22   :  { %p352_p2 = por %p351_p1, %p350_p0 }
  0x24   :  { %p353_p3 = pnand %p352_p2, %p346_p13 }
  0x26   :  { %356 = shalt.err (!%p353_p3)
}
  0x27   :  { %s436_s14 = smov 128   ;;  %s437_s15 = smov 8  }
  0x28   :  { %24 = dma.hbm_to_vmem [thread:$0]  %s597_s0, 384, %s473_s18, [#allocation3], %s436_s14, %s436_s14, %s437_s15  }
  0x29   :  { %s51_s21 = scalar_lea.hbm %s599_s2, 256  ;;  %s438_s22 = smov [#allocation7]  }
  0x2a   :  { %s53_s23 = sshll.u32 %s438_s22, 4  ;;  %s381_s26 = scalar_lea.hbm %s599_s2, 384  ;;  %s54_s23 = int_to_ptr.vmem [resolvable:$true] %s53_s23 }
  0x2b   :  { %p358_p4 = scmp.ne.s32.totalorder %s51_s21, %s381_s26  ;;  %p360_p5 = scmp.lt.u32.totalorder %s51_s21, %s599_s2 }
  0x2c   :  { %p361_p6 = scmp.lt.u32.totalorder %s381_s26, %s381_s26  ;;  %p363_p8 = scmp.lt.u32.totalorder %s381_s26, %s51_s21 }
  0x2e   :  { %p362_p7 = por %p361_p6, %p360_p5 }
  0x30   :  { %p364_p9 = por %p363_p8, %p362_p7 }
  0x32   :  { %p365_p10 = pnand %p364_p9, %p358_p4 }
  0x34   :  { %368 = shalt.err (!%p365_p10)
}
  0x35   :  { %s369_s0 = scalar_lea.vmem %s54_s23, 128  ;;  %p374_p12 = scmp.lt.s32.totalorder %s54_s23, %s54_s23 }
  0x36   :  { %p370_p11 = scmp.ne.s32.totalorder %s54_s23, %s369_s0  ;;  %p375_p13 = scmp.lt.s32.totalorder %s369_s0, %s369_s0 }
  0x38   :  { %p376_p0 = por %p375_p13, %p374_p12 }
  0x3a   :  { %p377_p1 = pnand %p376_p0, %p370_p11 }
  0x3c   :  { %380 = shalt.err (!%p377_p1)
}
  0x3d   :  { %56 = dma.hbm_to_vmem [thread:$0]  %s51_s21, 128, %s54_s23, [#allocation6]  }
  0x3e   :  { %61 = vsyncadd [#allocation9], 128  ;;  %s439_s18 = smov [#allocation8]   ;;  %s382_s5 = scalar_lea.hbm %s600_s3, 384 }
  0x3f   :  { %s62_s29 = sshll.u32 %s439_s18, 4  ;;  %p383_p2 = scmp.ne.s32.totalorder %s600_s3, %s382_s5  ;;  %s63_s29 = int_to_ptr.vmem [resolvable:$true] %s62_s29 }
  0x40   :  { %p386_p3 = scmp.lt.u32.totalorder %s382_s5, %s600_s3 }
  0x42   :  { %p388_p4 = pnand %p386_p3, %p383_p2 }
  0x44   :  { %391 = shalt.err (!%p388_p4)
}
  0x45   :  { %s392_s10 = scalar_lea.vmem %s63_s29, 384  ;;  %s396_s11 = scalar_lea.vmem %s63_s29, 512 }
  0x46   :  { %p393_p5 = scmp.ne.s32.totalorder %s63_s29, %s392_s10  ;;  %p397_p6 = scmp.lt.s32.totalorder %s63_s29, %s63_s29 }
  0x47   :  { %p398_p7 = scmp.lt.s32.totalorder %s396_s11, %s392_s10 }
  0x49   :  { %p399_p8 = por %p398_p7, %p397_p6 }
  0x4b   :  { %p400_p9 = pnand %p399_p8, %p393_p5 }
  0x4d   :  { %403 = shalt.err (!%p400_p9)
}
  0x4e   :  { %68 = dma.hbm_to_vmem [thread:$0]  %s600_s3, 384, %s63_s29, [#allocation9], %s436_s14, %s436_s14, %s437_s15  }
  0x4f   :  { %426 = dma.done.wait [#allocation3], 512  }
  0x50   :  { %427 = vsyncadd [#allocation3], 4294966784 }
  0x51   :  { %428 = dma.done.wait [#allocation6], 256  }
  0x52   :  { %429 = vsyncadd [#allocation6], 4294967040 }
  0x53   :  { %430 = dma.done.wait [#allocation9], 512  }
  0x54   :  { %431 = vsyncadd [#allocation9], 4294966784  ;;  %v95_v0 = vlaneseq  ;;  %v538_v3 = vld [vmem:[#allocation2 + $0x8] sm:$0xff]  ;;  %v540_v4 = vld [vmem:[#allocation2] sm:$0xff]  ;;  %s440_s1 = smov 1   ;;  %s441_s3 = smov 127  }
  0x55   :  { %v93_v5 = vld [vmem:[#allocation2 + $0x10] sm:$0xff]  ;;  %116 = vrot.lane.b32.xlu1 %v538_v3, %s440_s1  ;;  %114 = vrot.lane.b32.xlu0 %v540_v4, %s440_s1  ;;  %v442_v7 = vmov -inf|-inf   ;;  %vm226_vm6 = vcmp.ge.f32.partialorder %v538_v3, 0.7  ;;  %v234_v55 = vld [vmem:[#allocation8 + $0x8] sm:$0xff] }
  0x56   :  { %v535_v1 = vshrl.u32 %v95_v0, 7  ;;  %v112_v8 = vand.u32 127, %v95_v0  ;;  %vm238_vm8 = vcmp.ge.f32.partialorder %v234_v55, 0.7  ;;  %v233_v60 = vld [vmem:[#allocation8] sm:$0xff]  ;;  %v235_v62 = vld [vmem:[#allocation8 + $0x10] sm:$0xff] }
  0x57   :  { %vm225_vm11 = vcmp.ge.f32.partialorder %v540_v4, 0.7  ;;  %vm237_vm13 = vcmp.ge.f32.partialorder %v233_v60, 0.7  ;;  %vm239_vm15 = vcmp.ge.f32.partialorder %v235_v62, 0.7 }
  0x58   :  { %v98_v2 = vadd.s32 16, %v535_v1  ;;  %vm113_vm1 = vcmp.eq.s32.totalorder %v112_v8, 0  ;;  %vm126_vm2 = vcmp.ge.s32.totalorder %v112_v8, 99  ;;  %vm179_vm3 = vcmp.lt.s32.totalorder %v535_v1, 1 }
  0x59   :  { %127 = vrot.lane.b32.xlu0 %v540_v4, %s441_s3  ;;  %vm200_vm4 = vcmp.lt.s32.totalorder %v535_v1, 7  ;;  %v186_v25 = vsub.s32 0, %v535_v1  ;;  %vm171_vm5 = vcmp.eq.s32.totalorder %v535_v1, 0  ;;  %v444_v1 = vmov 0  }
  0x5a   :  { %vm105_vm0 = vcmp.lt.s32.totalorder %v98_v2, 20 }
  0x5b   :  { %v544_v6 = vsel %vm105_vm0, %v93_v5, -inf }
  0x5c   :  { %118 = vrot.lane.b32.xlu1 %v544_v6, %s440_s1  ;;  %vm227_vm10 = vcmp.ge.f32.partialorder %v544_v6, 0.7 }
  0x5d   :  { %129 = vrot.lane.b32.xlu0 %v538_v3, %s441_s3 }
  0x60   :  { %131 = vrot.lane.b32.xlu1 %v544_v6, %s441_s3 }
  0x61   :  { %304 = vrot.lane.b32.xlu0 %v442_v7, %s440_s1 }
  0x64   :  { %309 = vrot.lane.b32.xlu1 %v442_v7, %s441_s3 }
  0xc7   :  { %v117_v9 = vpop.permute.xlu1 %116  ;;  %v115_v10 = vpop.permute.xlu0 %114 }
  0xc8   :  { %v122_v13 = vsel %vm113_vm1, -inf, %v115_v10  ;;  %v123_v19 = vsel %vm113_vm1, -inf, %v117_v9 }
  0xcb   :  { %v128_v12 = vpop.permute.xlu0 %127 }
  0xcc   :  { %v135_v14 = vsel %vm126_vm2, -inf, %v128_v12 }
  0xcd   :  { %v139_v15 = vmax.f32 %v122_v13, %v135_v14 }
  0xce   :  { %v119_v11 = vpop.permute.xlu1 %118 }
  0xcf   :  { %v143_v16 = vmax.f32 %v540_v4, %v139_v15  ;;  %v130_v18 = vpop.permute.xlu0 %129  ;;  %v124_v20 = vsel %vm113_vm1, -inf, %v119_v11 }
  0xd0   :  { %v136_v22 = vsel %vm126_vm2, -inf, %v130_v18 }
  0xd1   :  { %v140_v24 = vmax.f32 %v123_v19, %v136_v22  ;;  %v175_v26 = vrot.slane %v143_v16, 7  ;;  %v196_v27 = vrot.slane %v143_v16, 1 }
  0xd2   :  { %v132_v17 = vpop.permute.xlu1 %131 }
  0xd3   :  { %v137_v21 = vsel %vm126_vm2, -inf, %v132_v17  ;;  %v144_v29 = vmax.f32 %v538_v3, %v140_v24  ;;  %v305_v31 = vpop.permute.xlu0 %304 }
  0xd4   :  { %v141_v23 = vmax.f32 %v124_v20, %v137_v21  ;;  %v307_v34 = vunpack.i.h.bf16 %v305_v31  ;;  %v306_v35 = vunpack.i.l.bf16 %v305_v31 }
  0xd5   :  { %v176_v38 = vrot.slane %v144_v29, 7  ;;  %v197_v39 = vrot.slane %v144_v29, 1 }
  0xd6   :  { %v145_v28 = vmax.f32 %v544_v6, %v141_v23  ;;  %v310_v30 = vpop.permute.xlu1 %309  ;;  %v157_v42 = vsel %vm113_vm1, -inf, %v307_v34  ;;  %v125_v43 = vsel %vm113_vm1, -inf, %v306_v35 }
  0xd7   :  { %v312_v32 = vunpack.i.h.bf16 %v310_v30  ;;  %v311_v33 = vunpack.i.l.bf16 %v310_v30  ;;  %v182_v44 = vsel %vm179_vm3, %v175_v26, %v176_v38  ;;  %v203_v47 = vsel %vm200_vm4, %v196_v27, %v197_v39 }
  0xd8   :  { %v177_v36 = vrot.slane %v145_v28, 7  ;;  %v198_v37 = vrot.slane %v145_v28, 1 }
  0xd9   :  { %v160_v40 = vsel %vm126_vm2, -inf, %v312_v32  ;;  %v138_v41 = vsel %vm126_vm2, -inf, %v311_v33 }
  0xda   :  { %v202_v45 = vsel %vm200_vm4, %v197_v39, %v198_v37  ;;  %v181_v46 = vsel %vm179_vm3, %v176_v38, %v177_v36  ;;  %v161_v49 = vmax.f32 %v157_v42, %v160_v40  ;;  %v142_v50 = vmax.f32 %v125_v43, %v138_v41 }
  0xdb   :  { %v214_v48 = vmax.f32 %v182_v44, %v202_v45 }
  0xdc   :  { %v187_v52 = vrot.slane %v161_v49, %v186_v25  ;;  %v178_v53 = vrot.slane %v142_v50, 7  ;;  %v199_v54 = vrot.slane %v142_v50, 1 }
  0xdd   :  { %v218_v51 = vmax.f32 %v144_v29, %v214_v48 }
  0xde   :  { %v183_v56 = vsel %vm179_vm3, %v178_v53, %v175_v26  ;;  %v201_v57 = vsel %vm200_vm4, %v198_v37, %v199_v54 }
  0xdf   :  { %vm222_vm7 = vcmp.eq.f32.partialorder %v538_v3, %v218_v51  ;;  %v188_v58 = vsel %vm171_vm5, %v187_v52, %v183_v56  ;;  %v215_v59 = vmax.f32 %v181_v46, %v201_v57 }
  0xe0   :  { %vm230_vm9 = vmand %vm222_vm7, %vm226_vm6  ;;  %v213_v61 = vmax.f32 %v188_v58, %v203_v47  ;;  %vm443_vm6 = vmmov 0  }
  0xe1   :  { %v219_v63 = vmax.f32 %v145_v28, %v215_v59  ;;  %vm242_vm12 = vmand %vm230_vm9, %vm238_vm8 }
  0xe2   :  { %v217_v0 = vmax.f32 %v143_v16, %v213_v61 }
  0xe3   :  { %vm223_vm14 = vcmp.eq.f32.partialorder %v544_v6, %v219_v63 }
  0xe4   :  { %vm221_vm0 = vcmp.eq.f32.partialorder %v540_v4, %v217_v0  ;;  %vm231_vm1 = vmand %vm223_vm14, %vm227_vm10 }
  0xe5   :  { %vm229_vm2 = vmand %vm221_vm0, %vm225_vm11 }
  0xe6   :  { %vm241_vm3 = vmand %vm229_vm2, %vm237_vm13 }
  0xe7   :  { %vm243_vm4 = vmand %vm231_vm1, %vm239_vm15 }
  0xe8   :  { %vm245_vm5 = vmpackc.low %vm242_vm12, %vm241_vm3 }
  0xe9   :  { %vm246_vm7 = vmpackc.low %vm443_vm6, %vm243_vm4 }
  0xea   :  { %vm247_vm8 = vmpackc.even %vm246_vm7, %vm245_vm5 }
  0xeb   :  { %v248_v2 = vsel %vm247_vm8, 16843009, %v444_v1 }
  0xec   :  { %v249_v3 = vunpack.c.0.s8 %v248_v2  ;;  %v250_v5 = vunpack.c.1.s8 %v248_v2  ;;  %v251_v7 = vunpack.c.2.s8 %v248_v2  ;;  %v252_v8 = vunpack.c.3.s8 %v248_v2 }
  0xee   :  { %v253_v9 = vpack.c.b16 %v249_v3, %v249_v3  ;;  %v255_v10 = vpack.c.b16 %v250_v5, %v250_v5  ;;  %v257_v6 = vpack.c.b16 %v251_v7, %v251_v7  ;;  %v259_v11 = vpack.c.b16 %v252_v8, %v252_v8 }
  0xf0   :  { %v254_v12 = vpack.c.b8 %v253_v9, %v253_v9  ;;  %v256_v4 = vpack.c.b8 %v255_v10, %v255_v10  ;;  %v258_v13 = vpack.c.b8 %v257_v6, %v257_v6  ;;  %v260_v14 = vpack.c.b8 %v259_v11, %v259_v11 }
  0xf2   :  { %261 = vst [vmem:[#allocation10] sm:$0x3] %v254_v12  ;;  %262 = vst [vmem:[#allocation10 + $0x2] sm:$0x3] %v256_v4 }
  0xf3   :  { %263 = vst [vmem:[#allocation10 + $0x4] sm:$0x3] %v258_v13  ;;  %264 = vst [vmem:[#allocation10 + $0x6] sm:$0x3] %v260_v14 }
  0xf4   :  { %269 = vsyncadd [#allocation4], 32  ;;  %s445_s14 = smov [#allocation10]  }
  0xf5   :  { %s270_s15 = sshll.u32 %s445_s14, 4  ;;  %s271_s15 = int_to_ptr.vmem [resolvable:$true] %s270_s15 }
  0xf6   :  { %s404_s16 = scalar_lea.vmem %s271_s15, 96  ;;  %s408_s17 = scalar_lea.vmem %s271_s15, 128 }
  0xf7   :  { %p405_p10 = scmp.ne.s32.totalorder %s271_s15, %s404_s16  ;;  %p409_p11 = scmp.lt.s32.totalorder %s271_s15, %s271_s15 }
  0xf8   :  { %p410_p12 = scmp.lt.s32.totalorder %s408_s17, %s404_s16 }
  0xfa   :  { %p411_p13 = por %p410_p12, %p409_p11 }
  0xfc   :  { %p412_p0 = pnand %p411_p13, %p405_p10 }
  0xfe   :  { %415 = shalt.err (!%p412_p0)
}
  0xff   :  { %s416_s21 = scalar_lea.hbm %s601_s4, 96 }
 0x100   :  { %p417_p1 = scmp.ne.s32.totalorder %s601_s4, %s416_s21  ;;  %p420_p2 = scmp.lt.u32.totalorder %s416_s21, %s601_s4 }
 0x102   :  { %p422_p3 = pnand %p420_p2, %p417_p1 }
 0x104   :  { %425 = shalt.err (!%p422_p3)
}
 0x105   :  { %s446_s26 = smov 32   ;;  %s447_s27 = smov 2  }
 0x106   :  { %276 = dma.vmem_to_hbm [thread:$0]  %s271_s15, 96, %s601_s4, [#allocation4], %s446_s26, %s446_s26, %s447_s27  }
 0x107   :  { %432 = dma.done.wait [#allocation4], 128  }
 0x108   :  { %433 = vsyncadd [#allocation4], 4294967168 }
 0x109   :  { %280 = vsyncpa [#allocation3], 1 }
 0x10a   :  { %281 = vsyncpa [#allocation6], 1 }
 0x10b   :  { %282 = vsyncpa [#allocation9], 1 }
 0x10c   :  { %283 = vsyncpa [#allocation4], 1 }

</bundles_post_ra>
